<compile_context>
chip_gen: v6e
topology: v6e:2x2x1
jax: 0.10.0
libtpu: 0.0.40
codegen_flags: <defaults>
</compile_context>

<pallas_src>
import functools

import jax
import jax.numpy as jnp
from jax.experimental import pallas as pl
from jax.experimental.pallas import tpu as pltpu

_MIB = 1024 * 1024


def _round_up(a, b):
    return -(-a // b) * b


def _vmem_capacity_bytes():
    """Best-effort VMEM capacity query; conservative (v7x-like) fallback."""
    try:
        info = pltpu.get_tpu_info()
        for name in ("vmem_capacity_bytes", "vmem_size_bytes", "vmem_bytes"):
            v = getattr(info, name, None)
            if v:
                return int(v)
    except Exception:
        pass
    return 64 * _MIB


# ---------------------------------------------------------------------------
# Fused path: whole (C, S) sample resident in VMEM, one pass over x.
# ---------------------------------------------------------------------------
def _fused_kernel(x_ref, w1t_ref, b1_ref, w2_ref, b2_ref, cw_ref, cb_ref,
                  o_ref, *, inv_s):
    """grid = (B,). x_ref/o_ref: (1, C, S). Weights replicated, f32."""
    x = x_ref[0]                                                  # (C, S) native dtype

    # channel squeeze: f32 spatial mean
    mean_c = jnp.sum(x.astype(jnp.float32), axis=-1, keepdims=True) * inv_s   # (C, 1)
    # channel excitation MLP (fc1 -> relu -> fc2 -> sigmoid), f32
    z1 = jnp.sum(w1t_ref[...] * mean_c, axis=0, keepdims=True) + b1_ref[...]  # (1, Cr)
    z1 = jnp.maximum(z1, 0.0)
    z2 = jnp.sum(w2_ref[...] * z1, axis=-1, keepdims=True) + b2_ref[...]      # (C, 1)
    gate = jax.nn.sigmoid(z2)                                                  # (C, 1) f32

    cse = x * gate.astype(x.dtype)

    # spatial excitation: 1x1x1 conv over C (VPU multiply + sublane reduce, f32 acc)
    xw = x * cw_ref[...].astype(x.dtype)                                       # (C, S)
    sp = jnp.sum(xw.astype(jnp.float32), axis=0, keepdims=True) + cb_ref[...]  # (1, S) f32
    sse = x * jax.nn.sigmoid(sp).astype(x.dtype)

    o_ref[0] = jnp.maximum(cse, sse).astype(o_ref.dtype)


# ---------------------------------------------------------------------------
# Tiled path, pass 1: f32 partial spatial sums (reduction optionally split
# in two for megacore when B is small). Ragged tiles are masked in-kernel.
# ---------------------------------------------------------------------------
def _partial_sum_kernel(x_ref, psum_ref, *, s_tile, n_s_inner, s_total,
                        need_mask):
    """grid = (n_split, B, n_s_inner). x_ref: (1, C, s_tile); psum: (1,1,C,1)."""
    s = pl.program_id(2)

    @pl.when(s == 0)
    def _():
        psum_ref[...] = jnp.zeros_like(psum_ref)

    x = x_ref[0].astype(jnp.float32)                              # (C, s_tile)
    if need_mask:
        tile = pl.program_id(0) * n_s_inner + s                   # global tile index
        lane = jax.lax.broadcasted_iota(jnp.int32, x.shape, 1)
        x = jnp.where(tile * s_tile + lane < s_total, x, 0.0)     # drop OOB lanes
    psum_ref[...] += jnp.sum(x, axis=-1, keepdims=True)[None, None]


# ---------------------------------------------------------------------------
# Tiled path, micro-kernel: channel excitation MLP on the (B, C) means.
# ---------------------------------------------------------------------------
def _gate_kernel(psum_ref, w1t_ref, b1_ref, w2_ref, b2_ref, gate_ref, *, inv_s):
    """Single invocation; psum: (n_split, B, C, 1) f32; gate: (B, C, 1) f32."""
    n_split = psum_ref.shape[0]
    batch = psum_ref.shape[1]
    for b in range(batch):                                        # tiny, unrolled
        acc = psum_ref[0, b]                                      # (C, 1)
        for i in range(1, n_split):
            acc = acc + psum_ref[i, b]
        mean_c = acc * inv_s                                      # (C, 1)
        z1 = jnp.sum(w1t_ref[...] * mean_c, axis=0, keepdims=True) + b1_ref[...]
        z1 = jnp.maximum(z1, 0.0)                                 # (1, Cr)
        z2 = jnp.sum(w2_ref[...] * z1, axis=-1, keepdims=True) + b2_ref[...]
        gate_ref[b] = jax.nn.sigmoid(z2)                          # (C, 1)


# ---------------------------------------------------------------------------
# Tiled path, pass 2: apply channel gate + spatial gate, streaming S tiles.
# ---------------------------------------------------------------------------
def _apply_gates_kernel(x_ref, gate_ref, cw_ref, cb_ref, o_ref):
    """grid = (B, n_s_tiles), both parallel. Native-dtype streaming."""
    x = x_ref[0]                                                  # (C, s_tile)
    cse = x * gate_ref[0].astype(x.dtype)                         # (C,1) channel gate
    xw = x * cw_ref[...].astype(x.dtype)                          # (C, s_tile)
    sp = jnp.sum(xw.astype(jnp.float32), axis=0, keepdims=True) + cb_ref[...]
    sse = x * jax.nn.sigmoid(sp).astype(x.dtype)                  # (1, s_tile) bcast
    o_ref[0] = jnp.maximum(cse, sse).astype(o_ref.dtype)


# ---------------------------------------------------------------------------
# Wrapper
# ---------------------------------------------------------------------------
def channel_spatial_se_3d(x, fc1_w, fc1_b, fc2_w, fc2_b, conv_w, conv_b,
                          *, force_tiled=False, s_tile_target_bytes=None):
    """x: (B, C, D, H, W) float32 or bfloat16. Returns same shape/dtype."""
    B, C, D, H, W = x.shape
    Cr = fc1_w.shape[0]
    S = D * H * W
    dtype = x.dtype
    isz = jnp.dtype(dtype).itemsize
    f32 = jnp.float32

    x2 = x.reshape(B, C, S)

    # Per-generation budgets: v5e/v6e have 128 MiB VMEM, v7x only 64 MiB.
    vmem_cap = _vmem_capacity_bytes()
    big_vmem = vmem_cap >= 100 * _MIB
    vmem_limit = (64 if big_vmem else 48) * _MIB
    fused_budget = (44 if big_vmem else 22) * _MIB
    p2_target = (s_tile_target_bytes if s_tile_target_bytes is not None
                 else (8 if big_vmem else 4) * _MIB)
    p1_target = (3 * p2_target) // 2         # pass 1 has no writeback -> larger tile

    # Small gate parameters (kept f32; MLP math is always f32).
    w1t = fc1_w.T.astype(f32)                 # (C, Cr)
    b1 = fc1_b.reshape(1, Cr).astype(f32)     # (1, Cr)
    w2 = fc2_w.astype(f32)                    # (C, Cr)  (PyTorch layout out=C, in=Cr)
    b2 = fc2_b.reshape(C, 1).astype(f32)      # (C, 1)
    cw = conv_w.reshape(C, 1).astype(f32)     # (C, 1)   1x1x1 conv weight
    cb = conv_b.reshape(1, 1).astype(f32)     # (1, 1)

    # ---- fused, sample-resident fast path ----------------------------------
    bytes_x = C * S * isz
    fused_est = 4 * bytes_x + 2 * C * S * 4 + (1 << 16)   # 2xin + 2xout + f32 temps
    if (not force_tiled) and fused_est <= fused_budget:
        rep = lambda shape: pl.BlockSpec(shape, lambda b: tuple(0 for _ in shape))
        out = pl.pallas_call(
            functools.partial(_fused_kernel, inv_s=1.0 / S),
            out_shape=jax.ShapeDtypeStruct((B, C, S), dtype),
            grid_spec=pltpu.PrefetchScalarGridSpec(
                num_scalar_prefetch=0,
                grid=(B,),
                in_specs=[
                    pl.BlockSpec((1, C, S), lambda b: (b, 0, 0)),   # x (full sample)
                    rep((C, Cr)), rep((1, Cr)),                      # fc1 W^T, b
                    rep((C, Cr)), rep((C, 1)),                       # fc2 W, b
                    rep((C, 1)), rep((1, 1)),                        # conv w, b
                ],
                out_specs=pl.BlockSpec((1, C, S), lambda b: (b, 0, 0)),
            ),
            compiler_params=pltpu.CompilerParams(
                dimension_semantics=("parallel",),
                vmem_limit_bytes=vmem_limit),
            cost_estimate=pl.CostEstimate(
                flops=int(8 * B * C * S),
                transcendentals=int(B * (C + S)),
                bytes_accessed=int(2 * B * C * S * isz)),
        )(x2, w1t, b1, w2, b2, cw, cb)
        return out.reshape(B, C, D, H, W)

    # ---- tiled path, pass 1: partial spatial sums ---------------------------
    s_tile1 = max(128, (p1_target // max(1, C * isz)) // 128 * 128)
    s_tile1 = min(s_tile1, _round_up(S, 128))
    n_s_tot = -(-S // s_tile1)
    n_split = 2 if (B < 2 and n_s_tot >= 2) else 1      # extra parallel axis (v7x 2 TCs)
    n_s_inner = -(-n_s_tot // n_split)
    need_mask = not (S % s_tile1 == 0 and n_s_tot % n_split == 0)

    def x1_map(split, b, s):
        # clamp so a redundant (fully-masked) re-read replaces any OOB block index
        return (b, 0, jnp.minimum(split * n_s_inner + s, n_s_tot - 1))

    psum = pl.pallas_call(
        functools.partial(_partial_sum_kernel, s_tile=s_tile1,
                          n_s_inner=n_s_inner, s_total=S, need_mask=need_mask),
        out_shape=jax.ShapeDtypeStruct((n_split, B, C, 1), jnp.float32),
        grid_spec=pltpu.PrefetchScalarGridSpec(
            num_scalar_prefetch=0,
            grid=(n_split, B, n_s_inner),
            in_specs=[pl.BlockSpec((1, C, s_tile1), x1_map)],
            out_specs=pl.BlockSpec((1, 1, C, 1),
                                   lambda split, b, s: (split, b, 0, 0)),
        ),
        compiler_params=pltpu.CompilerParams(
            dimension_semantics=("parallel", "parallel", "arbitrary"),
            vmem_limit_bytes=vmem_limit),
        cost_estimate=pl.CostEstimate(
            flops=int(B * C * S), transcendentals=0,
            bytes_accessed=int(B * C * S * isz)),
    )(x2)

    # ---- tiny channel-gate MLP (O(B*C), single invocation) ------------------
    gate = pl.pallas_call(
        functools.partial(_gate_kernel, inv_s=1.0 / S),
        out_shape=jax.ShapeDtypeStruct((B, C, 1), jnp.float32),
    )(psum, w1t, b1, w2, b2)

    # ---- tiled path, pass 2: apply both gates -------------------------------
    s_tile2 = max(128, (p2_target // max(1, C * isz)) // 128 * 128)
    s_tile2 = min(s_tile2, _round_up(S, 128))
    n_s2 = -(-S // s_tile2)
    rep2 = lambda shape: pl.BlockSpec(shape, lambda b, s: tuple(0 for _ in shape))

    out = pl.pallas_call(
        _apply_gates_kernel,
        out_shape=jax.ShapeDtypeStruct((B, C, S), dtype),
        grid_spec=pltpu.PrefetchScalarGridSpec(
            num_scalar_prefetch=0,
            grid=(B, n_s2),
            in_specs=[
                pl.BlockSpec((1, C, s_tile2), lambda b, s: (b, 0, s)),  # x
                pl.BlockSpec((1, C, 1), lambda b, s: (b, 0, 0)),        # channel gate
                rep2((C, 1)),                                           # conv w
                rep2((1, 1)),                                           # conv b
            ],
            out_specs=pl.BlockSpec((1, C, s_tile2), lambda b, s: (b, 0, s)),
        ),
        compiler_params=pltpu.CompilerParams(
            dimension_semantics=("parallel", "parallel"),
            vmem_limit_bytes=vmem_limit),
        cost_estimate=pl.CostEstimate(
            flops=int(7 * B * C * S), transcendentals=int(B * S),
            bytes_accessed=int(2 * B * C * S * isz)),
    )(x2, gate, cw, cb)

    return out.reshape(B, C, D, H, W)


# ---------------------------------------------------------------------------
# Plain-JAX reference matching the PyTorch forward semantics (no matmuls, so
# the baseline itself is not subject to TPU default matmul precision).
# ---------------------------------------------------------------------------
def reference(x, fc1_w, fc1_b, fc2_w, fc2_b, conv_w, conv_b):
    xf = x.astype(jnp.float32)
    mean = xf.mean(axis=(2, 3, 4))                                          # (B, C)
    z1 = jnp.maximum(jnp.sum(mean[:, :, None] * fc1_w.T[None], axis=1) + fc1_b, 0.0)
    z2 = jnp.sum(z1[:, None, :] * fc2_w[None], axis=-1) + fc2_b             # (B, C)
    gate = jax.nn.sigmoid(z2)
    cse = xf * gate[:, :, None, None, None]
    sp = jnp.sum(xf * conv_w[None, :, None, None, None], axis=1) + conv_b   # (B, D, H, W)
    sse = xf * jax.nn.sigmoid(sp)[:, None]
    return jnp.maximum(cse, sse)


if __name__ == "__main__":
    B, C, D, H, W = 2, 4, 8, 8, 8
    reduction_ratio = 2
    Cr = C // reduction_ratio

    key = jax.random.PRNGKey(0)
    kx, k1, k2, k3, k4, k5, k6, kx2 = jax.random.split(key, 8)

    x = jax.random.normal(kx, (B, C, D, H, W), dtype=jnp.float32)

    # Parameters with nn.Linear / nn.Conv3d shapes.
    fc1_w = 0.3 * jax.random.normal(k1, (Cr, C), dtype=jnp.float32)   # Linear(C -> Cr)
    fc1_b = 0.1 * jax.random.normal(k2, (Cr,), dtype=jnp.float32)
    fc2_w = 0.3 * jax.random.normal(k3, (C, Cr), dtype=jnp.float32)   # Linear(Cr -> C)
    fc2_b = 0.1 * jax.random.normal(k4, (C,), dtype=jnp.float32)
    conv_w = 0.3 * jax.random.normal(k5, (C,), dtype=jnp.float32)     # Conv3d(C -> 1, k=1)
    conv_b = 0.1 * jax.random.normal(k6, (), dtype=jnp.float32)
    params = (fc1_w, fc1_b, fc2_w, fc2_b, conv_w, conv_b)

    ref = reference(x, *params)

    # 1) fused sample-resident path (default for samples that fit VMEM).
    out = jax.block_until_ready(channel_spatial_se_3d(x, *params))
    assert out.shape == (B, C, D, H, W)
    assert jnp.allclose(out, ref, rtol=1e-5, atol=1e-5), "fused f32 mismatch"

    # 2) forced tiled two-pass path (multi-tile cross-tile mean accumulation).
    out_t = jax.block_until_ready(
        channel_spatial_se_3d(x, *params, force_tiled=True,
                              s_tile_target_bytes=2048))
    assert jnp.allclose(out_t, ref, rtol=1e-5, atol=1e-5), "tiled f32 mismatch"

    # 3) tiled path, B=1, ragged (non-128-multiple) S, split spatial reduction.
    x1 = jax.random.normal(kx2, (1, C, 5, 7, 9), dtype=jnp.float32)
    ref1 = reference(x1, *params)
    out1 = jax.block_until_ready(
        channel_spatial_se_3d(x1, *params, force_tiled=True,
                              s_tile_target_bytes=2048))
    assert jnp.allclose(out1, ref1, rtol=1e-5, atol=1e-5), "ragged/split mismatch"

    # 4) bf16 streaming I/O (gate math in f32, no whole-tile f32 upcast of x).
    x_bf = x.astype(jnp.bfloat16)
    ref_bf = reference(x_bf, *params)
    out_bf = jax.block_until_ready(channel_spatial_se_3d(x_bf, *params))
    assert out_bf.dtype == jnp.bfloat16
    assert jnp.allclose(out_bf.astype(jnp.float32), ref_bf,
                        rtol=5e-2, atol=5e-2), "bf16 fused mismatch"

    out_bf_t = jax.block_until_ready(
        channel_spatial_se_3d(x_bf, *params, force_tiled=True,
                              s_tile_target_bytes=2048))
    assert jnp.allclose(out_bf_t.astype(jnp.float32), ref_bf,
                        rtol=5e-2, atol=5e-2), "bf16 tiled mismatch"

    print("KERNEL_OK")
</pallas_src>

<mosaic_0001>
module attributes {stable_mosaic.version = 11 : i64} {
  func.func @_fused_kernel(%arg0: i32, %arg1: memref<1x4x512xf32, #tpu.memory_space<vmem>>, %arg2: memref<4x2xf32, #tpu.memory_space<vmem>>, %arg3: memref<1x2xf32, #tpu.memory_space<vmem>>, %arg4: memref<4x2xf32, #tpu.memory_space<vmem>>, %arg5: memref<4x1xf32, #tpu.memory_space<vmem>>, %arg6: memref<4x1xf32, #tpu.memory_space<vmem>>, %arg7: memref<1x1xf32, #tpu.memory_space<vmem>>, %arg8: memref<1x4x512xf32, #tpu.memory_space<vmem>>) attributes {dimension_semantics = [#tpu.dimension_semantics<parallel>], iteration_bounds = array<i64: 2>, scalar_prefetch = 0 : i64, scratch_operands = 0 : i64, tpu.core_type = #tpu.core_type<tc>, window_params = [{transform_indices = @transform_0, window_bounds = array<i64: 1, 4, 512>}, {pipeline_mode = #tpu.pipeline_mode<synchronous>, transform_indices = @transform_1, window_bounds = array<i64: 4, 2>}, {pipeline_mode = #tpu.pipeline_mode<synchronous>, transform_indices = @transform_2, window_bounds = array<i64: 1, 2>}, {pipeline_mode = #tpu.pipeline_mode<synchronous>, transform_indices = @transform_3, window_bounds = array<i64: 4, 2>}, {pipeline_mode = #tpu.pipeline_mode<synchronous>, transform_indices = @transform_4, window_bounds = array<i64: 4, 1>}, {pipeline_mode = #tpu.pipeline_mode<synchronous>, transform_indices = @transform_5, window_bounds = array<i64: 4, 1>}, {pipeline_mode = #tpu.pipeline_mode<synchronous>, transform_indices = @transform_6, window_bounds = array<i64: 1, 1>}, {transform_indices = @transform_7, window_bounds = array<i64: 1, 4, 512>}]} {
    %c0 = arith.constant 0 : index
    %c0_0 = arith.constant 0 : index
    %c0_1 = arith.constant 0 : index
    %0 = vector.load %arg1[%c0, %c0_0, %c0_1] : memref<1x4x512xf32, #tpu.memory_space<vmem>>, vector<1x4x512xf32>
    %1 = vector.shape_cast %0 : vector<1x4x512xf32> to vector<4x512xf32>
    %cst = arith.constant dense<0.000000e+00> : vector<4xf32>
    %2 = vector.multi_reduction <add>, %1, %cst [1] : vector<4x512xf32> to vector<4xf32>
    %3 = vector.shape_cast %2 : vector<4xf32> to vector<4x1xf32>
    %cst_2 = arith.constant 0.001953125 : f32
    %4 = vector.broadcast %cst_2 : f32 to vector<4x1xf32>
    %5 = arith.mulf %3, %4 : vector<4x1xf32>
    %c0_3 = arith.constant 0 : index
    %c0_4 = arith.constant 0 : index
    %6 = vector.load %arg2[%c0_3, %c0_4] : memref<4x2xf32, #tpu.memory_space<vmem>>, vector<4x2xf32>
    %7 = vector.broadcast %5 : vector<4x1xf32> to vector<4x2xf32>
    %8 = arith.mulf %6, %7 : vector<4x2xf32>
    %cst_5 = arith.constant dense<0.000000e+00> : vector<2xf32>
    %9 = vector.multi_reduction <add>, %8, %cst_5 [0] : vector<4x2xf32> to vector<2xf32>
    %10 = vector.shape_cast %9 : vector<2xf32> to vector<1x2xf32>
    %c0_6 = arith.constant 0 : index
    %c0_7 = arith.constant 0 : index
    %11 = vector.load %arg3[%c0_6, %c0_7] : memref<1x2xf32, #tpu.memory_space<vmem>>, vector<1x2xf32>
    %12 = arith.addf %10, %11 : vector<1x2xf32>
    %cst_8 = arith.constant 0.000000e+00 : f32
    %13 = vector.broadcast %cst_8 : f32 to vector<1x2xf32>
    %14 = arith.maximumf %12, %13 : vector<1x2xf32>
    %c0_9 = arith.constant 0 : index
    %c0_10 = arith.constant 0 : index
    %15 = vector.load %arg4[%c0_9, %c0_10] : memref<4x2xf32, #tpu.memory_space<vmem>>, vector<4x2xf32>
    %16 = vector.broadcast %14 : vector<1x2xf32> to vector<4x2xf32>
    %17 = arith.mulf %15, %16 : vector<4x2xf32>
    %cst_11 = arith.constant dense<0.000000e+00> : vector<4xf32>
    %18 = vector.multi_reduction <add>, %17, %cst_11 [1] : vector<4x2xf32> to vector<4xf32>
    %19 = vector.shape_cast %18 : vector<4xf32> to vector<4x1xf32>
    %c0_12 = arith.constant 0 : index
    %c0_13 = arith.constant 0 : index
    %20 = vector.load %arg5[%c0_12, %c0_13] : memref<4x1xf32, #tpu.memory_space<vmem>>, vector<4x1xf32>
    %21 = arith.addf %19, %20 : vector<4x1xf32>
    %22 = arith.negf %21 : vector<4x1xf32>
    %23 = math.exp %22 : vector<4x1xf32>
    %cst_14 = arith.constant 1.000000e+00 : f32
    %24 = vector.broadcast %cst_14 : f32 to vector<4x1xf32>
    %25 = arith.addf %24, %23 : vector<4x1xf32>
    %26 = arith.divf %24, %25 : vector<4x1xf32>
    %27 = vector.broadcast %26 : vector<4x1xf32> to vector<4x512xf32>
    %28 = arith.mulf %1, %27 : vector<4x512xf32>
    %c0_15 = arith.constant 0 : index
    %c0_16 = arith.constant 0 : index
    %29 = vector.load %arg6[%c0_15, %c0_16] : memref<4x1xf32, #tpu.memory_space<vmem>>, vector<4x1xf32>
    %30 = vector.broadcast %29 : vector<4x1xf32> to vector<4x512xf32>
    %31 = arith.mulf %1, %30 : vector<4x512xf32>
    %cst_17 = arith.constant dense<0.000000e+00> : vector<512xf32>
    %32 = vector.multi_reduction <add>, %31, %cst_17 [0] : vector<4x512xf32> to vector<512xf32>
    %33 = vector.shape_cast %32 : vector<512xf32> to vector<1x512xf32>
    %c0_18 = arith.constant 0 : index
    %c0_19 = arith.constant 0 : index
    %34 = vector.load %arg7[%c0_18, %c0_19] : memref<1x1xf32, #tpu.memory_space<vmem>>, vector<1x1xf32>
    %35 = vector.broadcast %34 : vector<1x1xf32> to vector<1x512xf32>
    %36 = arith.addf %33, %35 : vector<1x512xf32>
    %37 = arith.negf %36 : vector<1x512xf32>
    %38 = math.exp %37 : vector<1x512xf32>
    %cst_20 = arith.constant 1.000000e+00 : f32
    %39 = vector.broadcast %cst_20 : f32 to vector<1x512xf32>
    %40 = arith.addf %39, %38 : vector<1x512xf32>
    %41 = arith.divf %39, %40 : vector<1x512xf32>
    %42 = vector.broadcast %41 : vector<1x512xf32> to vector<4x512xf32>
    %43 = arith.mulf %1, %42 : vector<4x512xf32>
    %44 = arith.maximumf %28, %43 : vector<4x512xf32>
    %c0_21 = arith.constant 0 : index
    %c0_22 = arith.constant 0 : index
    %c0_23 = arith.constant 0 : index
    %45 = vector.load %arg8[%c0_21, %c0_22, %c0_23] : memref<1x4x512xf32, #tpu.memory_space<vmem>>, vector<1x4x512xf32>
    %46 = vector.shape_cast %45 : vector<1x4x512xf32> to vector<4x512xf32>
    %47 = vector.shape_cast %44 : vector<4x512xf32> to vector<1x4x512xf32>
    tpu.vector_store %arg8[%c0_21, %c0_22, %c0_23], %47 {strides = array<i32>} : memref<1x4x512xf32, #tpu.memory_space<vmem>>, vector<1x4x512xf32>,
    return
  }
  func.func @transform_0(%arg0: i32) -> (i32, i32, i32) {
    %c0_i32 = arith.constant 0 : i32
    %c0_i32_0 = arith.constant 0 : i32
    %c0_i32_1 = arith.constant 0 : i32
    return %arg0, %c0_i32, %c0_i32_0 : i32, i32, i32
  }
  func.func @transform_1(%arg0: i32) -> (i32, i32) {
    %c0_i32 = arith.constant 0 : i32
    %c0_i32_0 = arith.constant 0 : i32
    %c0_i32_1 = arith.constant 0 : i32
    return %c0_i32, %c0_i32_0 : i32, i32
  }
  func.func @transform_2(%arg0: i32) -> (i32, i32) {
    %c0_i32 = arith.constant 0 : i32
    %c0_i32_0 = arith.constant 0 : i32
    %c0_i32_1 = arith.constant 0 : i32
    return %c0_i32, %c0_i32_0 : i32, i32
  }
  func.func @transform_3(%arg0: i32) -> (i32, i32) {
    %c0_i32 = arith.constant 0 : i32
    %c0_i32_0 = arith.constant 0 : i32
    %c0_i32_1 = arith.constant 0 : i32
    return %c0_i32, %c0_i32_0 : i32, i32
  }
  func.func @transform_4(%arg0: i32) -> (i32, i32) {
    %c0_i32 = arith.constant 0 : i32
    %c0_i32_0 = arith.constant 0 : i32
    %c0_i32_1 = arith.constant 0 : i32
    return %c0_i32, %c0_i32_0 : i32, i32
  }
  func.func @transform_5(%arg0: i32) -> (i32, i32) {
    %c0_i32 = arith.constant 0 : i32
    %c0_i32_0 = arith.constant 0 : i32
    %c0_i32_1 = arith.constant 0 : i32
    return %c0_i32, %c0_i32_0 : i32, i32
  }
  func.func @transform_6(%arg0: i32) -> (i32, i32) {
    %c0_i32 = arith.constant 0 : i32
    %c0_i32_0 = arith.constant 0 : i32
    %c0_i32_1 = arith.constant 0 : i32
    return %c0_i32, %c0_i32_0 : i32, i32
  }
  func.func @transform_7(%arg0: i32) -> (i32, i32, i32) {
    %c0_i32 = arith.constant 0 : i32
    %c0_i32_0 = arith.constant 0 : i32
    %c0_i32_1 = arith.constant 0 : i32
    return %arg0, %c0_i32, %c0_i32_0 : i32, i32, i32
  }
}

</mosaic_0001>

<bundles_post_ra>
// kernel: tpu_custom_call.1
= control target key start
LH: loop header
LB: loop body
LE: loop exit
PB: predicated region body
PF: predicated region fallthrough
CT: control target
= control target key end

     0   :  { %s976_s0 = inlined_call_operand.hbm [shape: f32[2,4,512], index: 0, kind: input, shape index: {}]   ;;  %s977_s1 = inlined_call_operand.vmem [shape: f32[4,2], index: 1, kind: input, shape index: {}]   ;;  %s978_s2 = inlined_call_operand.vmem [shape: f32[1,2], index: 2, kind: input, shape index: {}]   ;;  %s979_s3 = inlined_call_operand.vmem [shape: f32[4,2], index: 3, kind: input, shape index: {}]   ;;  %s980_s4 = inlined_call_operand.vmem [shape: f32[4,1], index: 4, kind: input, shape index: {}]   ;;  %s981_s5 = inlined_call_operand.vmem [shape: f32[4,1], index: 5, kind: input, shape index: {}]   ;;  %s982_s6 = inlined_call_operand.<no memory space> [shape: f32[1,1], index: 6, kind: input, shape index: {}]   ;;  %s983_s7 = inlined_call_operand.hbm [shape: f32[2,4,512], index: 7, kind: output, shape index: {}]  }
   0x1   :  { %v12_v0 = vstv %s982_s6 }
   0x2   :  { %13 = vst [vmem:[#allocation2] sm:$0x1] %v12_v0 }
   0x3   :  { %14 = vsyncpa [#allocation4], 0 }
   0x4   :  { %16 = vsyncpa [#allocation4 + $0x1], 0 }
   0x5   :  { %17 = vsyncpa [#allocation5], 0 }
   0x6   :  { %19 = vsyncpa [#allocation5 + $0x1], 0  ;;  %s780_s26 = smov 0   ;;  %s782_s27 = smov 0  }
   0x7   :  { %s784_s28 = smov 0   ;;  %s786_s29 = smov 0  }
   0x8 LB: > { %s801_s6 = sadd.s32 4294967295, %s731_s29   ;;  %s546_s30 = sadd.s32 4294967294, %s731_s29   ;;  %s731_s29 = sphi %s786_s29, %s1000_s29   ;;  %s727_s28 = sphi %s784_s28, %s999_s28   ;;  %s723_s27 = sphi %s782_s27, %s998_s27   ;;  %s719_s26 = sphi %s780_s26, %s997_s26  }
   0x9   : > { %s805_s8 = sadd.s32 1, %s731_s29   ;;  %s32_s9 = sadd.s32 1, %s727_s28 }
   0xa   : > { %s29_s10 = ssub.s32 %s731_s29, %s805_s8  ;;  %p39_p0 = scmp.ne.s32.totalorder %s727_s28, %s723_s27 }
   0xb   : > { %p30_p1 = scmp.eq.s32.totalorder %s29_s10, 0  ;;  %p40_p2 = scmp.eq.s32.totalorder %s731_s29, 0 }
   0xc   : > { %p45_p3 = scmp.ne.s32.totalorder %s723_s27, %s719_s26  ;;  %p46_p4 = scmp.eq.s32.totalorder %s801_s6, 0 }
   0xd   : > { %s817_s11 = scalar_select %p30_p1, %s727_s28, %s32_s9  }
   0xe   : > { %p819_p5 = por %p40_p2, %p39_p0  ;;  %p823_p6 = por %p46_p4, %p45_p3 }
   0xf   : > { %p195_p7 = scmp.eq.s32.totalorder %s801_s6, 1  ;;  %p201_p8 = scmp.eq.s32.totalorder %s546_s30, 1 }
  0x10   : > { %s987_s13 = scalar_select %p823_p6, 1, 0 }
  0x11   : > { %p579_p10 = scmp.lt.s32.totalorder %s731_s29, 2  ;;  %p830_p11 = por %p195_p7, %p39_p0 }
  0x12   : > { %p834_p12 = por %p201_p8, %p45_p3  ;;  %s239_s16 = sand.u32 1, %s727_s28  }
  0x13   : > { %s988_s14 = scalar_select %p830_p11, 1, 0 }
  0x14   : > { %s989_s15 = scalar_select %p834_p12, 1, 0 }
  0x15   : > { %s565_s17 = sshll.u32 %s731_s29, 8  ;;  %s549_s18 = sshll.u32 %s239_s16, 4 }
  0x16   : > { %s843_s21 = scalar_lea.hbm %s976_s0, %s565_s17  ;;  %s243_s22 = scalar_lea.vmem [#allocation3], %s549_s18 }
  0x17   : > { %s251_s23 = sshll.u32 %s243_s22, 4  ;;  %p847_p13 = pnand %p579_p10, %p819_p5  ;;  %s851_s23 = int_to_ptr.vmem [resolvable:$true] %s251_s23 }
  0x18   : > { %s240_s25 = scalar_lea.sflag [#allocation4], %s239_s16  ;;  %s639_s30 = scalar_lea.hbm %s843_s21, 256 }
  0x19   : > { %p640_p2 = scmp.ne.s32.totalorder %s843_s21, %s639_s30  ;;  %p641_p3 = pneg %p847_p13 }
  0x1a   : > { %s644_s12 = scalar_lea.hbm %s976_s0, 512  ;;  %p645_p5 = scmp.lt.s32.totalorder %s843_s21, %s976_s0 }
  0x1b   : > { %p642_p4 = pnand %p641_p3, %p640_p2  ;;  %p646_p8 = scmp.lt.s32.totalorder %s644_s12, %s639_s30 }
  0x1d   : > { %p643_p7 = pneg %p642_p4  ;;  %p647_p10 = por %p646_p8, %p645_p5 }
  0x1f   : > { %p648_p9 = pnand %p647_p10, %p643_p7 }
  0x21   : > { %651 = shalt.err (!%p648_p9)
}
  0x22   : > { %s652_s16 = scalar_lea.vmem %s851_s23, 256  ;;  %s733_s19 = smov [#allocation3]  }
  0x23   : > { %p653_p0 = scmp.ne.s32.totalorder %s851_s23, %s652_s16  ;;  %s657_s20 = sshll.u32 %s733_s19, 4  ;;  %s658_s20 = int_to_ptr.vmem [resolvable:$false] %s657_s20 }
  0x24   : > { %s659_s22 = scalar_lea.vmem %s658_s20, 512  ;;  %p660_p4 = scmp.lt.s32.totalorder %s851_s23, %s658_s20 }
  0x25   : > { %p655_p1 = pnand %p653_p0, %p641_p3  ;;  %p661_p12 = scmp.lt.s32.totalorder %s659_s22, %s652_s16 }
  0x27   : > { %p656_p2 = pneg %p655_p1  ;;  %p662_p11 = por %p661_p12, %p660_p4 }
  0x29   : > { %p663_p6 = pnand %p662_p11, %p656_p2 }
  0x2b   : > { %666 = shalt.err (!%p663_p6)
}
  0x2c   : > { %574 = dma.hbm_to_vmem [thread:$0]  (!%p847_p13), %s843_s21, 256, %s851_s23, %s240_s25  }
  0x2d   : > { %p991_p9 = scmp.lt.s32.totalorder %s731_s29, 3  ;;  %p992_p7 = scmp.ge.s32.totalorder %s731_s29, 1 }
  0x2f   : > { %p257_p0 = pnand %p992_p7, %p991_p9 }
  0x30   : > { %s878_s30 = sand.u32 (!%p257_p0), 1, %s723_s27   ;;  %p993_p6 = scmp.ne.s32.totalorder (!%p257_p0), %s987_s13, 0 }
  0x31   : > { %260 = sbr.rel (%p257_p0) target bundleno = 544 (0x220), region = 48  ;;  %s553_s9 = sshll.u32 (!%p257_p0), %s878_s30, 4 }
  0x32   : > { %s263_s10 = scalar_lea.sflag (!%p257_p0), [#allocation4], %s878_s30  ;;  %s266_s24 = scalar_lea.vmem (!%p257_p0), [#allocation3], %s553_s9 }
  0x36   : > { %710 = dma.done.wait (%p993_p6), %s263_s10, 256  }
  0x37   : > { %712 = vsyncadd (%p993_p6), %s263_s10, 4294967040  ;;  %vm305_vm0 = vcmask 1043456   ;;  %v888_v1 = vld [vmem:[%s266_s24] sm:$0xff]  ;;  %v890_v2 = vld [vmem:[%s266_s24 + $0x8] sm:$0xff]  ;;  %v734_v13 = vmov 0   ;;  %vm318_vm1 = vcmask 11264   ;;  %v330_v23 = vlaneseq }
  0x38   : > { %v301_v3 = vcombine.high %v888_v1, %v888_v1  ;;  %v302_v4 = vcombine.high %v890_v2, %v890_v2  ;;  %v306_v5 = vsel %vm305_vm0, %v888_v1, 0.0  ;;  %v309_v7 = vsel %vm305_vm0, %v890_v2, 0.0  ;;  %v360_v12 = vld [vmem:[%s981_s5] sm:$0xf]  ;;  %615 = vset.pattern.permute.xlu1 %v734_v13  ;;  %616 = vset.pattern.permute.xlu0 %v734_v13  ;;  %s566_s22 = sshll.u32 %s801_s6, 8  ;;  %s296_s10 = scalar_lea.vmem [#allocation6], %s553_s9 }
  0x39   : > { %363 = vperm.xlu1 %615, %v360_v12   ;;  %v409_v14 = vld [vmem:[#allocation2] sm:$0x1]  ;;  %v331_v26 = vshrl.u32 %v330_v23, 7  ;;  %v735_v43 = vmov 839922192   ;;  %s476_s24 = sshll.u32 %s296_s10, 4  ;;  %s939_s23 = scalar_lea.hbm %s983_s7, %s566_s22  ;;  %s477_s24 = int_to_ptr.vmem [resolvable:$true] %s476_s24 }
  0x3a   : > { %v307_v6 = vsel %vm305_vm0, %v301_v3, 0.0  ;;  %v311_v9 = vsel %vm305_vm0, %v302_v4, 0.0  ;;  %v316_v15 = vld [vmem:[%s977_s1] sm:$0xf]  ;;  %v351_v44 = vunpack.c.l.s4 %v735_v43  ;;  %s462_s6 = scalar_lea.sflag [#allocation5], %s878_s30  ;;  %s667_s9 = scalar_lea.vmem %s477_s24, 256 }
  0x3b   : > { %v308_v8 = vadd.f32 %v307_v6, %v306_v5  ;;  %v326_v27 = vld [vmem:[%s978_s2] sm:$0x1]  ;;  %v332_v30 = vsub.s32 0, %v331_v26  ;;  %p668_p11 = scmp.ne.s32.totalorder %s477_s24, %s667_s9  ;;  %p994_p12 = scmp.ne.s32.totalorder %s988_s14, 0 }
  0x3c   : > { %v329_v32 = vld [vmem:[%s979_s3] sm:$0xf]  ;;  %v352_v45 = vunpack.c.0.s8 %v351_v44  ;;  %s736_s25 = smov [#allocation6]  }
  0x3d   : > { %v310_v10 = vadd.f32 %v309_v7, %v308_v8  ;;  %412 = vperm.xlu1 %615, %v409_v14   ;;  %v338_v36 = vld [vmem:[%s980_s4] sm:$0xf]  ;;  %p669_p13 = pnand %p668_p11, %p994_p12  ;;  %s671_s12 = sshll.u32 %s736_s25, 4  ;;  %s672_s12 = int_to_ptr.vmem [resolvable:$false] %s671_s12 }
  0x3e   : > { %v919_v46 = vsub.s32 %v352_v45, %v331_v26  ;;  %s673_s17 = scalar_lea.vmem %s672_s12, 512  ;;  %p674_p3 = scmp.lt.s32.totalorder %s477_s24, %s672_s12 }
  0x3f   : > { %v312_v11 = vadd.f32 %v311_v9, %v310_v10  ;;  %p670_p1 = pneg %p669_p13  ;;  %p675_p5 = scmp.lt.s32.totalorder %s673_s17, %s667_s9 }
  0x41   : > { %313 = vadd.xlane.f32.xlu0 %v312_v11  ;;  %p676_p8 = por %p675_p5, %p674_p3 }
  0x43   : > { %p677_p10 = pnand %p676_p8, %p670_p1 }
  0xb4   : > { %v364_v47 = vpop.permute.xlu1 %363 }
  0xb5   : > { %v371_v48 = vrot.slane %v364_v47, %v919_v46 }
  0xb7   : > { %v373_v49 = vmul.f32 %v371_v48, %v888_v1  ;;  %v374_v50 = vmul.f32 %v371_v48, %v890_v2 }
  0xb8   : > { %v413_v13 = vpop.permute.xlu1 %412 }
  0xb9   : > { %v377_v51 = vcombine.high %v373_v49, %v373_v49  ;;  %v378_v52 = vcombine.high %v374_v50, %v374_v50  ;;  %v381_v53 = vsel %vm305_vm0, %v373_v49, 0.0  ;;  %v395_v54 = vsel %vm305_vm0, %v374_v50, 0.0 }
  0xba   : > { %v382_v56 = vrot.slane %v381_v53, 4  ;;  %v396_v58 = vrot.slane %v395_v54, 4 }
  0xbb   : > { %v388_v55 = vsel %vm305_vm0, %v377_v51, 0.0  ;;  %v402_v57 = vsel %vm305_vm0, %v378_v52, 0.0 }
  0xbc   : > { %v389_v59 = vrot.slane %v388_v55, 4  ;;  %v403_v60 = vrot.slane %v402_v57, 4  ;;  %v383_v61 = vadd.f32 %v382_v56, %v381_v53  ;;  %v397_v62 = vadd.f32 %v396_v58, %v395_v54 }
  0xbe   : > { %v390_v63 = vadd.f32 %v389_v59, %v388_v55  ;;  %v404_v0 = vadd.f32 %v403_v60, %v402_v57  ;;  %v384_v3 = vrot.slane %v383_v61, 2  ;;  %v398_v4 = vrot.slane %v397_v62, 2 }
  0xc0   : > { %v391_v5 = vrot.slane %v390_v63, 2  ;;  %v405_v6 = vrot.slane %v404_v0, 2  ;;  %v385_v7 = vadd.f32 %v384_v3, %v383_v61  ;;  %v399_v8 = vadd.f32 %v398_v4, %v397_v62 }
  0xc2   : > { %v392_v9 = vadd.f32 %v391_v5, %v390_v63  ;;  %v406_v10 = vadd.f32 %v405_v6, %v404_v0  ;;  %v386_v11 = vrot.slane %v385_v7, 1  ;;  %v400_v12 = vrot.slane %v399_v8, 1 }
  0xc4   : > { %v393_v14 = vrot.slane %v392_v9, 1 }
  0xca   : > { %v314_v16 = vpop.xlane.xlu0 %313 }
  0xcb   : > { %v315_v17 = vmul.f32 0.001953125, %v314_v16  ;;  %v387_v16 = vadd.f32 %v386_v11, %v385_v7 }
  0xcd   : > { %v317_v18 = vmul.f32 %v316_v15, %v315_v17  ;;  %v407_v15 = vrot.slane %v406_v10, 1  ;;  %v418_v17 = vrot.slane %v413_v13, %v332_v30 }
  0xcf   : > { %v319_v19 = vsel %vm318_vm1, %v317_v18, 0.0  ;;  %v401_v18 = vadd.f32 %v400_v12, %v399_v8 }
  0xd0   : > { %v320_v20 = vrot.slane %v319_v19, 4 }
  0xd2   : > { %v321_v21 = vadd.f32 %v320_v20, %v319_v19  ;;  %v394_v19 = vadd.f32 %v393_v14, %v392_v9  ;;  %v408_v20 = vadd.f32 %v407_v15, %v406_v10 }
  0xd4   : > { %v322_v22 = vrot.slane %v321_v21, 2  ;;  %v420_v23 = vadd.f32 %v418_v17, %v394_v19 }
  0xd6   : > { %v323_v24 = vadd.f32 %v322_v22, %v321_v21  ;;  %v419_v21 = vadd.f32 %v418_v17, %v387_v16  ;;  %v421_v22 = vadd.f32 %v418_v17, %v401_v18 }
  0xd8   : > { %v324_v25 = vrot.slane %v323_v24, 1  ;;  %v558_v26 = vmul.f32 -1.442695, %v421_v22 }
  0xda   : > { %v325_v28 = vadd.f32 %v324_v25, %v323_v24  ;;  %v422_v24 = vadd.f32 %v418_v17, %v408_v20  ;;  %v556_v25 = vmul.f32 -1.442695, %v419_v21 }
  0xdc   : > { %v327_v29 = vadd.f32 %v326_v27, %v325_v28  ;;  %v557_v27 = vmul.f32 -1.442695, %v420_v23  ;;  %v559_v28 = vmul.f32 -1.442695, %v422_v24 }
  0xde   : > { %v328_v31 = vmax.f32 %v327_v29, 0.0 }
  0xe0   : > { %v333_v33 = vrot.slane %v328_v31, %v332_v30 }
  0xe2   : > { %v334_v34 = vmul.f32 %v333_v33, %v329_v32 }
  0xe4   : > { %v335_v35 = vsel %vm318_vm1, %v334_v34, 0.0 }
  0xe5   : > { %336 = vadd.xlane.f32.xlu0 %v335_v35 }
 0x16e   : > { %v337_v37 = vpop.xlane.xlu0 %336 }
 0x16f   : > { %v339_v38 = vadd.f32 %v338_v36, %v337_v37 }
 0x171   : > { %v555_v39 = vmul.f32 -1.442695, %v339_v38 }
 0x173   : > { %619 = vpow2.f32 %v555_v39 }
 0x180   : > { %v620_v40 = vpop.eup %619 }
 0x181   : > { %v343_v41 = vadd.f32 1.0, %v620_v40 }
 0x183   : > { %621 = vrcp.f32 %v343_v41 }
 0x184   : > { %623 = vpow2.f32 %v556_v25 }
 0x185   : > { %625 = vpow2.f32 %v558_v26 }
 0x186   : > { %627 = vpow2.f32 %v557_v27 }
 0x187   : > { %629 = vpow2.f32 %v559_v28 }
 0x190   : > { %v622_v42 = vpop.eup %621 }
 0x191   : > { %348 = vperm.xlu0 %616, %v622_v42   ;;  %v624_v29 = vpop.eup %623 }
 0x192   : > { %v626_v31 = vpop.eup %625  ;;  %v435_v30 = vadd.f32 1.0, %v624_v29 }
 0x193   : > { %v628_v32 = vpop.eup %627  ;;  %v437_v34 = vadd.f32 1.0, %v626_v31 }
 0x194   : > { %v630_v33 = vpop.eup %629  ;;  %v436_v35 = vadd.f32 1.0, %v628_v32  ;;  %631 = vrcp.f32 %v435_v30 }
 0x195   : > { %v438_v36 = vadd.f32 1.0, %v630_v33  ;;  %633 = vrcp.f32 %v437_v34 }
 0x196   : > { %635 = vrcp.f32 %v436_v35 }
 0x197   : > { %637 = vrcp.f32 %v438_v36 }
 0x1a1   : > { %v632_v37 = vpop.eup %631 }
 0x1a2   : > { %v634_v38 = vpop.eup %633 }
 0x1a3   : > { %v636_v39 = vpop.eup %635 }
 0x1a4   : > { %v638_v40 = vpop.eup %637  ;;  %v451_v41 = vcombine.low %v632_v37, %v636_v39 }
 0x1a5   : > { %v452_v42 = vcombine.low %v634_v38, %v638_v40 }
 0x1a6   : > { %v455_v45 = vmul.f32 %v451_v41, %v888_v1 }
 0x1a7   : > { %v456_v47 = vmul.f32 %v452_v42, %v890_v2 }
 0x20c   : > { %v349_v43 = vpop.permute.xlu0 %348 }
 0x20d   : > { %v356_v44 = vrot.slane %v349_v43, %v919_v46 }
 0x20f   : > { %v358_v48 = vmul.f32 %v356_v44, %v888_v1  ;;  %v359_v49 = vmul.f32 %v356_v44, %v890_v2 }
 0x211   : > { %v457_v50 = vmax.f32 %v358_v48, %v455_v45  ;;  %v458_v51 = vmax.f32 %v359_v49, %v456_v47 }
 0x213   : > { %459 = vst [vmem:[%s296_s10] sm:$0xff] %v457_v50  ;;  %460 = vst [vmem:[%s296_s10 + $0x8] sm:$0xff] %v458_v51 }
 0x214   : > { %680 = shalt.err (!%p677_p10)
}
 0x215   : > { %s681_s18 = scalar_lea.hbm %s939_s23, 256  ;;  %s685_s19 = scalar_lea.hbm %s983_s7, 512 }
 0x216   : > { %p682_p2 = scmp.ne.s32.totalorder %s939_s23, %s681_s18  ;;  %p686_p7 = scmp.lt.s32.totalorder %s939_s23, %s983_s7 }
 0x217   : > { %p687_p0 = scmp.lt.s32.totalorder %s685_s19, %s681_s18 }
 0x218   : > { %p683_p4 = pnand %p682_p2, %p994_p12 }
 0x219   : > { %p688_p6 = por %p687_p0, %p686_p7 }
 0x21a   : > { %p684_p9 = pneg %p683_p4 }
 0x21c   : > { %p689_p11 = pnand %p688_p6, %p684_p9 }
 0x21e   : > { %692 = shalt.err (!%p689_p11)
}
 0x21f   : > { %569 = dma.vmem_to_hbm [thread:$0]  (%p994_p12), %s477_s24, 256, %s939_s23, %s462_s6  }
 0x220 PF: > { %s488_s10 = sand.u32 1, %s719_s26   ;;  %p995_p13 = scmp.ne.s32.totalorder %s989_s15, 0 }
 0x221   : > { %p996_p1 = scmp.ge.s32.totalorder %s731_s29, 2  ;;  %s489_s13 = scalar_lea.sflag [#allocation5], %s488_s10 }
 0x223   : > { %p576_p3 = pnand %p996_p1, %p995_p13 }
 0x225   : > { %p577_p5 = pneg %p576_p3 }
 0x227   : > { %714 = dma.done.wait (%p577_p5), %s489_s13, 256  }
 0x228   : > { %716 = vsyncadd (%p577_p5), %s489_s13, 4294967040  ;;  %p22_p8 = scmp.ge.s32.totalorder %s805_s8, 4   ;;  %s997_s26 = smov %s723_s27 }
 0x229   : > { %s998_s27 = smov %s727_s28  ;;  %s999_s28 = smov %s817_s11 }
 0x22a   : > { %s1000_s29 = smov %s805_s8  ;;  %24 = sbr.rel (!%p22_p8) target bundleno = 8 (0x8), region = 93 }
 0x22f   :  { %494 = vsyncpa [#allocation4], 1 }
 0x230   :  { %496 = vsyncpa [#allocation4 + $0x1], 1 }
 0x231   :  { %497 = vsyncpa [#allocation5], 1 }
 0x232   :  { %499 = vsyncpa [#allocation5 + $0x1], 1 }

</bundles_post_ra>
